<compile_context>
chip_gen: v6e
topology: v6e:2x2x1
jax: 0.10.0
libtpu: 0.0.40
codegen_flags: <defaults>
</compile_context>

<pallas_src>
import math

import jax
import jax.numpy as jnp
from jax.experimental import pallas as pl
from jax.experimental.pallas import tpu as pltpu


def _make_conv_kernel(M, Cin, C1, C2, C3, use_relu, cdt):
    """Fused 3-conv kernel on a 2-D slab of M = BT*L1 rows (one row per output t)."""
    act = (lambda v: jnp.maximum(v, 0.0)) if use_relu else jnp.tanh
    kin = 3 * Cin                       # conv1 im2col lanes; slab carries kin+2 lanes

    def kernel(x_ref, w1_ref, b1_ref, w2_ref, b2_ref, w3_ref, b3_ref,
               o_ref, p1_ref, p2_ref):
        x = x_ref[...]                                           # (M, kin+2), cdt
        # Boundary masks (ride in as slab lanes): 0 on the first / last row of
        # each batch element, 1 elsewhere.  Values are exact 0/1 in any dtype.
        mprev = x[:, kin:kin + 1].astype(jnp.float32)            # (M, 1) 0 on first rows
        mnext = x[:, kin + 1:kin + 2].astype(jnp.float32)        # (M, 1) 0 on last rows

        # ---- conv1 (k=3, stride=2, pad=0): taps pre-fused (im2col) -> 1 matmul.
        # The 2 mask lanes contract against zero rows of w1, so they are inert.
        h1 = act(jnp.dot(x, w1_ref[...], preferred_element_type=jnp.float32)
                 + b1_ref[...])                                  # (M, C1) f32

        # ---- conv2 (k=3, stride=1, pad=1): build [h[r-1] | h[r] | h[r+1]] in a
        # wide tap slab so ONE aligned (M, 3*C1) read feeds ONE matmul.
        #   operand row r lives at slab row 8 + r
        #   lanes [0:C1]      <- h1[r-1], zeroed where r is a batch-first row
        #   lanes [C1:2C1]    <- h1[r]
        #   lanes [2C1:3C1]   <- h1[r+1], zeroed where r is a batch-last  row
        p1_ref[8:9, 0:C1] = jnp.zeros((1, C1), jnp.float32)                   # r=0 "prev" pad
        p1_ref[7 + M:8 + M, 2 * C1:3 * C1] = jnp.zeros((1, C1), jnp.float32)  # r=M-1 "next" pad
        p1_ref[9:9 + M, 0:C1] = h1 * mnext           # row 8+r <- h1[r-1] * [r not batch-first]
        p1_ref[8:8 + M, C1:2 * C1] = h1
        p1_ref[7:7 + M, 2 * C1:3 * C1] = h1 * mprev  # row 8+r <- h1[r+1] * [r not batch-last]
        t2 = p1_ref[8:8 + M, :].astype(cdt)                      # (M, 3*C1) aligned read
        h2 = act(jnp.dot(t2, w2_ref[...], preferred_element_type=jnp.float32)
                 + b2_ref[...])                                  # (M, C2) f32

        # ---- conv3 (k=3, stride=1, pad=1): same trick.
        p2_ref[8:9, 0:C2] = jnp.zeros((1, C2), jnp.float32)
        p2_ref[7 + M:8 + M, 2 * C2:3 * C2] = jnp.zeros((1, C2), jnp.float32)
        p2_ref[9:9 + M, 0:C2] = h2 * mnext
        p2_ref[8:8 + M, C2:2 * C2] = h2
        p2_ref[7:7 + M, 2 * C2:3 * C2] = h2 * mprev
        t3 = p2_ref[8:8 + M, :].astype(cdt)                      # (M, 3*C2) aligned read
        o_ref[...] = act(jnp.dot(t3, w3_ref[...], preferred_element_type=jnp.float32)
                         + b3_ref[...]).astype(o_ref.dtype)      # (M, C3) slab store

    return kernel


def conv_layer_forward(x_ncl, params_oih, use_relu=True,
                       matmul_dtype=jnp.float32, max_block_rows=None):
    """x_ncl: (B, Cin, L) f32 -> (B, hidden, L1) f32, matching CONVLayer.forward."""
    B, Cin, L = x_ncl.shape
    (w1, b1), (w2, b2), (w3, b3) = params_oih          # w: (Cout, Cin, K), b: (Cout,)
    K = 3
    assert L >= K, "length must be >= kernel size"
    L1 = (L - K) // 2 + 1                              # conv1 output length
    C1, C2, C3 = w1.shape[0], w2.shape[0], w3.shape[0]
    cdt = jnp.dtype(matmul_dtype)
    kin = K * Cin

    # ---- wrapper-side layout plumbing: conv1 im2col + boundary-mask lanes ----
    x_lc = jnp.transpose(x_ncl, (0, 2, 1)).astype(jnp.float32)          # (B, L, Cin)
    taps = [x_lc[:, k:k + 2 * L1 - 1:2, :] for k in range(K)]           # 3 x (B, L1, Cin)
    core = jnp.concatenate(taps, axis=-1)                               # (B, L1, kin)
    rel = jnp.arange(L1)
    m_first = (rel > 0).astype(jnp.float32)                             # 0 on first row of element
    m_last = (rel < L1 - 1).astype(jnp.float32)                         # 0 on last  row of element
    mask2 = jnp.broadcast_to(jnp.stack([m_first, m_last], -1)[None, :, :], (B, L1, 2))
    slab = jnp.concatenate([core, mask2], axis=-1)                      # (B, L1, kin+2)

    # ---- batch-tile size from an explicit VMEM budget (v7x: 64 MiB/TC) ----
    try:
        vmem_cap = int(pltpu.get_tpu_info().vmem_capacity_bytes)
    except Exception:
        vmem_cap = 64 * 1024 * 1024
    vmem_budget = min(int(vmem_cap * 0.45), 48 * 1024 * 1024)

    def _lanes(n):
        return -(-n // 128) * 128

    item = jnp.dtype(cdt).itemsize
    bytes_per_row = (
        2 * _lanes(kin + 2) * item        # input slab block (double-buffered)
        + 2 * _lanes(C3) * 4              # f32 output block (double-buffered)
        + _lanes(3 * C1) * 4              # conv2 tap slab (f32)
        + _lanes(3 * C2) * 4              # conv3 tap slab (f32)
        + (_lanes(C1) + _lanes(C2) + _lanes(3 * C1) + _lanes(3 * C2) + _lanes(C3)) * 4
    )                                     # + headroom for in-kernel temporaries
    rows_budget = max(L1, vmem_budget // bytes_per_row)
    if max_block_rows is not None:
        rows_budget = max(L1, min(rows_budget, max_block_rows))

    # BT granularity keeping the block sublane dim (BT*L1) a multiple of 8 when tiling.
    bt_step = 8 // math.gcd(L1, 8)
    bt_budget = max(bt_step, (rows_budget // L1) // bt_step * bt_step)
    half = (B + 1) // 2
    bt_half = ((half + bt_step - 1) // bt_step) * bt_step   # >= ceil(B/2): >=2 steps for v7x
    BT_t = min(bt_budget, bt_half)
    G_t = -(-B // BT_t)
    pad_t = G_t * BT_t - B
    if G_t <= 1 or (B * L1 <= rows_budget and 2 * pad_t >= B):
        BT, G = B, 1                       # single full-array block (no padding waste)
    else:
        BT, G = BT_t, G_t
    B_pad = G * BT
    if B_pad > B:
        slab = jnp.concatenate(
            [slab, jnp.zeros((B_pad - B, L1, kin + 2), jnp.float32)], axis=0)
    slab2d = slab.reshape(B_pad * L1, kin + 2).astype(cdt)
    M = BT * L1

    # ---- weights: (Cout, Cin, K) -> tap-fused 2-D matmul operands ----
    w1_k = jnp.transpose(w1, (2, 1, 0)).reshape(kin, C1)
    w1_k = jnp.concatenate([w1_k, jnp.zeros((2, C1), w1_k.dtype)], axis=0).astype(cdt)
    w2_k = jnp.transpose(w2, (2, 1, 0)).reshape(3 * C1, C2).astype(cdt)  # rows = [k0|k1|k2]
    w3_k = jnp.transpose(w3, (2, 1, 0)).reshape(3 * C2, C3).astype(cdt)
    b1r = b1.reshape(1, C1).astype(jnp.float32)
    b2r = b2.reshape(1, C2).astype(jnp.float32)
    b3r = b3.reshape(1, C3).astype(jnp.float32)

    vmem_limit = int(min(vmem_cap, max(32 << 20, M * bytes_per_row + (8 << 20))))

    kernel = _make_conv_kernel(M, Cin, C1, C2, C3, use_relu, cdt)
    out2d = pl.pallas_call(
        kernel,
        out_shape=jax.ShapeDtypeStruct((B_pad * L1, C3), jnp.float32),
        grid=(G,),
        in_specs=[
            pl.BlockSpec((M, kin + 2), lambda g: (g, 0)),      # activation slab (+mask lanes)
            pl.BlockSpec((kin + 2, C1), lambda g: (0, 0)),     # w1 (taps fused, 2 zero rows)
            pl.BlockSpec((1, C1), lambda g: (0, 0)),
            pl.BlockSpec((3 * C1, C2), lambda g: (0, 0)),      # w2 (taps fused)
            pl.BlockSpec((1, C2), lambda g: (0, 0)),
            pl.BlockSpec((3 * C2, C3), lambda g: (0, 0)),      # w3 (taps fused)
            pl.BlockSpec((1, C3), lambda g: (0, 0)),
        ],
        out_specs=pl.BlockSpec((M, C3), lambda g: (g, 0)),
        scratch_shapes=[
            pltpu.VMEM((M + 16, 3 * C1), jnp.float32),         # conv2 tap slab
            pltpu.VMEM((M + 16, 3 * C2), jnp.float32),         # conv3 tap slab
        ],
        compiler_params=pltpu.CompilerParams(
            dimension_semantics=("parallel",),
            vmem_limit_bytes=vmem_limit),
    )(slab2d, w1_k, b1r, w2_k, b2r, w3_k, b3r)

    out = out2d[:B * L1].reshape(B, L1, C3)
    return jnp.transpose(out, (0, 2, 1))                       # back to NCL


def make_params(key, input_dim, hidden_size, use_orthogonal=True, use_relu=True):
    """Deterministic init mirroring the module's init_ (orthogonal/xavier, gain, zero bias)."""
    gain = math.sqrt(2.0) if use_relu else 5.0 / 3.0
    K = 3
    dims = [(input_dim, hidden_size // 4),
            (hidden_size // 4, hidden_size // 2),
            (hidden_size // 2, hidden_size)]

    if use_orthogonal:
        init_fn = jax.nn.initializers.orthogonal(scale=gain)
    else:
        def init_fn(k, shape, dtype=jnp.float32):
            fan_out, fan_in = shape
            limit = gain * math.sqrt(6.0 / (fan_in + fan_out))
            return jax.random.uniform(k, shape, dtype, -limit, limit)

    params = []   # [(w (Cout, Cin, K), b (Cout,)), ...]
    for cin, cout in dims:
        key, sub = jax.random.split(key)
        w2d = init_fn(sub, (cout, cin * K), jnp.float32)   # torch flattens to (out, in*k)
        params.append((w2d.reshape(cout, cin, K), jnp.zeros((cout,), jnp.float32)))
    return params


def reference_forward(x_ncl, params_oih, use_relu=True, cast_dtype=None):
    """Pure-JAX reference (lax.conv) matching torch Conv1d semantics."""
    act = (lambda v: jnp.maximum(v, 0.0)) if use_relu else jnp.tanh
    strides = [(2,), (1,), (1,)]
    pads = ["VALID", [(1, 1)], [(1, 1)]]
    h = x_ncl.astype(jnp.float32)
    for (w, b), s, p in zip(params_oih, strides, pads):
        lhs, rhs = h, w
        if cast_dtype is not None:               # match the kernel's matmul precision policy
            lhs = lhs.astype(cast_dtype)
            rhs = rhs.astype(cast_dtype)
        h = jax.lax.conv_general_dilated(
            lhs, rhs, window_strides=s, padding=p,
            dimension_numbers=("NCH", "OIH", "NCH"),
            preferred_element_type=jnp.float32)
        h = act(h + b[None, :, None])
    return h


if __name__ == "__main__":
    # small shapes consistent with the module: batch=2, input_dim=4, length=16, hidden=32
    B, INPUT_DIM, L, HIDDEN = 2, 4, 16, 32
    L1 = (L - 3) // 2 + 1

    key = jax.random.PRNGKey(0)
    key, kx = jax.random.split(key)
    x = jax.random.normal(kx, (B, INPUT_DIM, L), dtype=jnp.float32)   # NCL, like torch

    # --- ReLU, f32 matmuls: exact module semantics ---------------------------
    params = make_params(key, INPUT_DIM, HIDDEN, use_orthogonal=True, use_relu=True)
    out = jax.block_until_ready(
        conv_layer_forward(x, params, use_relu=True, matmul_dtype=jnp.float32))
    ref = reference_forward(x, params, use_relu=True)
    assert out.shape == ref.shape == (B, HIDDEN, L1)
    assert jnp.allclose(out, ref, rtol=1e-4, atol=1e-4), "f32/ReLU mismatch vs lax.conv"

    # --- Tanh path ------------------------------------------------------------
    params_t = make_params(key, INPUT_DIM, HIDDEN, use_orthogonal=True, use_relu=False)
    out_t = jax.block_until_ready(
        conv_layer_forward(x, params_t, use_relu=False, matmul_dtype=jnp.float32))
    ref_t = reference_forward(x, params_t, use_relu=False)
    assert jnp.allclose(out_t, ref_t, rtol=1e-4, atol=1e-4), "f32/Tanh mismatch vs lax.conv"

    # --- Multi-tile grid path (forces G >= 2: exercises the v7x-parallel grid
    #     split and the batch-boundary masking across grid steps) --------------
    B2 = 16
    key, kx2 = jax.random.split(key)
    x2 = jax.random.normal(kx2, (B2, INPUT_DIM, L), dtype=jnp.float32)
    out2 = jax.block_until_ready(
        conv_layer_forward(x2, params, use_relu=True, max_block_rows=8 * L1))
    ref2 = reference_forward(x2, params, use_relu=True)
    assert out2.shape == ref2.shape == (B2, HIDDEN, L1)
    assert jnp.allclose(out2, ref2, rtol=1e-4, atol=1e-4), "tiled-grid mismatch vs lax.conv"

    # --- bf16 MXU operands (v6e/v7x perf option), f32 accumulation -----------
    out_bf = jax.block_until_ready(
        conv_layer_forward(x, params, use_relu=True, matmul_dtype=jnp.bfloat16))
    ref_bf = reference_forward(x, params, use_relu=True, cast_dtype=jnp.bfloat16)
    assert jnp.allclose(out_bf, ref_bf, rtol=2e-2, atol=2e-2), "bf16 mismatch vs matched ref"

    print("KERNEL_OK")
</pallas_src>

<mosaic_0001>
module attributes {stable_mosaic.version = 11 : i64} {
  func.func @kernel(%arg0: i32, %arg1: memref<14x14xf32, #tpu.memory_space<vmem>>, %arg2: memref<14x8xf32, #tpu.memory_space<vmem>>, %arg3: memref<1x8xf32, #tpu.memory_space<vmem>>, %arg4: memref<24x16xf32, #tpu.memory_space<vmem>>, %arg5: memref<1x16xf32, #tpu.memory_space<vmem>>, %arg6: memref<48x32xf32, #tpu.memory_space<vmem>>, %arg7: memref<1x32xf32, #tpu.memory_space<vmem>>, %arg8: memref<14x32xf32, #tpu.memory_space<vmem>>, %arg9: memref<30x24xf32, #tpu.memory_space<vmem>>, %arg10: memref<30x48xf32, #tpu.memory_space<vmem>>) attributes {dimension_semantics = [#tpu.dimension_semantics<parallel>], iteration_bounds = array<i64: 1>, scalar_prefetch = 0 : i64, scratch_operands = 2 : i64, tpu.core_type = #tpu.core_type<tc>, window_params = [{transform_indices = @transform_0, window_bounds = array<i64: 14, 14>}, {pipeline_mode = #tpu.pipeline_mode<synchronous>, transform_indices = @transform_1, window_bounds = array<i64: 14, 8>}, {pipeline_mode = #tpu.pipeline_mode<synchronous>, transform_indices = @transform_2, window_bounds = array<i64: 1, 8>}, {pipeline_mode = #tpu.pipeline_mode<synchronous>, transform_indices = @transform_3, window_bounds = array<i64: 24, 16>}, {pipeline_mode = #tpu.pipeline_mode<synchronous>, transform_indices = @transform_4, window_bounds = array<i64: 1, 16>}, {pipeline_mode = #tpu.pipeline_mode<synchronous>, transform_indices = @transform_5, window_bounds = array<i64: 48, 32>}, {pipeline_mode = #tpu.pipeline_mode<synchronous>, transform_indices = @transform_6, window_bounds = array<i64: 1, 32>}, {transform_indices = @transform_7, window_bounds = array<i64: 14, 32>}]} {
    %c0 = arith.constant 0 : index
    %c0_0 = arith.constant 0 : index
    %0 = vector.load %arg1[%c0, %c0_0] : memref<14x14xf32, #tpu.memory_space<vmem>>, vector<14x14xf32>
    %1 = vector.extract_strided_slice %0 {offsets = [0, 12], sizes = [14, 1], strides = [1, 1]} : vector<14x14xf32> to vector<14x1xf32>
    %2 = vector.extract_strided_slice %0 {offsets = [0, 13], sizes = [14, 1], strides = [1, 1]} : vector<14x14xf32> to vector<14x1xf32>
    %c0_1 = arith.constant 0 : index
    %c0_2 = arith.constant 0 : index
    %3 = vector.load %arg2[%c0_1, %c0_2] : memref<14x8xf32, #tpu.memory_space<vmem>>, vector<14x8xf32>
    %cst = arith.constant dense<0.000000e+00> : vector<14x8xf32>
    %4 = tpu.matmul %0, %3, %cst {dimension_numbers = #tpu.dot_dimension_numbers<[1], [0], [0], [1], [0, 0, 1, 1], [], []>} : vector<14x14xf32>, vector<14x8xf32>, vector<14x8xf32> -> vector<14x8xf32>
    %c0_3 = arith.constant 0 : index
    %c0_4 = arith.constant 0 : index
    %5 = vector.load %arg3[%c0_3, %c0_4] : memref<1x8xf32, #tpu.memory_space<vmem>>, vector<1x8xf32>
    %6 = vector.broadcast %5 : vector<1x8xf32> to vector<14x8xf32>
    %7 = arith.addf %4, %6 : vector<14x8xf32>
    %cst_5 = arith.constant 0.000000e+00 : f32
    %8 = vector.broadcast %cst_5 : f32 to vector<14x8xf32>
    %9 = arith.maximumf %7, %8 : vector<14x8xf32>
    %cst_6 = arith.constant 0.000000e+00 : f32
    %10 = vector.broadcast %cst_6 : f32 to vector<1x8xf32>
    %c8 = arith.constant 8 : index
    %c0_7 = arith.constant 0 : index
    %11 = vector.load %arg9[%c8, %c0_7] : memref<30x24xf32, #tpu.memory_space<vmem>>, vector<1x8xf32>
    tpu.vector_store %arg9[%c8, %c0_7], %10 {strides = array<i32>} : memref<30x24xf32, #tpu.memory_space<vmem>>, vector<1x8xf32>,
    %cst_8 = arith.constant 0.000000e+00 : f32
    %12 = vector.broadcast %cst_8 : f32 to vector<1x8xf32>
    %c21 = arith.constant 21 : index
    %c16 = arith.constant 16 : index
    %13 = vector.load %arg9[%c21, %c16] : memref<30x24xf32, #tpu.memory_space<vmem>>, vector<1x8xf32>
    tpu.vector_store %arg9[%c21, %c16], %12 {strides = array<i32>} : memref<30x24xf32, #tpu.memory_space<vmem>>, vector<1x8xf32>,
    %14 = vector.broadcast %2 : vector<14x1xf32> to vector<14x8xf32>
    %15 = arith.mulf %9, %14 : vector<14x8xf32>
    %c9 = arith.constant 9 : index
    %c0_9 = arith.constant 0 : index
    %16 = vector.load %arg9[%c9, %c0_9] : memref<30x24xf32, #tpu.memory_space<vmem>>, vector<14x8xf32>
    tpu.vector_store %arg9[%c9, %c0_9], %15 {strides = array<i32>} : memref<30x24xf32, #tpu.memory_space<vmem>>, vector<14x8xf32>,
    %c8_10 = arith.constant 8 : index
    %c8_11 = arith.constant 8 : index
    %17 = vector.load %arg9[%c8_10, %c8_11] : memref<30x24xf32, #tpu.memory_space<vmem>>, vector<14x8xf32>
    tpu.vector_store %arg9[%c8_10, %c8_11], %9 {strides = array<i32>} : memref<30x24xf32, #tpu.memory_space<vmem>>, vector<14x8xf32>,
    %18 = vector.broadcast %1 : vector<14x1xf32> to vector<14x8xf32>
    %19 = arith.mulf %9, %18 : vector<14x8xf32>
    %c7 = arith.constant 7 : index
    %c16_12 = arith.constant 16 : index
    %20 = vector.load %arg9[%c7, %c16_12] : memref<30x24xf32, #tpu.memory_space<vmem>>, vector<14x8xf32>
    tpu.vector_store %arg9[%c7, %c16_12], %19 {strides = array<i32>} : memref<30x24xf32, #tpu.memory_space<vmem>>, vector<14x8xf32>,
    %c8_13 = arith.constant 8 : index
    %c0_14 = arith.constant 0 : index
    %21 = vector.load %arg9[%c8_13, %c0_14] : memref<30x24xf32, #tpu.memory_space<vmem>>, vector<14x24xf32>
    %c0_15 = arith.constant 0 : index
    %c0_16 = arith.constant 0 : index
    %22 = vector.load %arg4[%c0_15, %c0_16] : memref<24x16xf32, #tpu.memory_space<vmem>>, vector<24x16xf32>
    %cst_17 = arith.constant dense<0.000000e+00> : vector<14x16xf32>
    %23 = tpu.matmul %21, %22, %cst_17 {dimension_numbers = #tpu.dot_dimension_numbers<[1], [0], [0], [1], [0, 0, 1, 1], [], []>} : vector<14x24xf32>, vector<24x16xf32>, vector<14x16xf32> -> vector<14x16xf32>
    %c0_18 = arith.constant 0 : index
    %c0_19 = arith.constant 0 : index
    %24 = vector.load %arg5[%c0_18, %c0_19] : memref<1x16xf32, #tpu.memory_space<vmem>>, vector<1x16xf32>
    %25 = vector.broadcast %24 : vector<1x16xf32> to vector<14x16xf32>
    %26 = arith.addf %23, %25 : vector<14x16xf32>
    %cst_20 = arith.constant 0.000000e+00 : f32
    %27 = vector.broadcast %cst_20 : f32 to vector<14x16xf32>
    %28 = arith.maximumf %26, %27 : vector<14x16xf32>
    %cst_21 = arith.constant 0.000000e+00 : f32
    %29 = vector.broadcast %cst_21 : f32 to vector<1x16xf32>
    %c8_22 = arith.constant 8 : index
    %c0_23 = arith.constant 0 : index
    %30 = vector.load %arg10[%c8_22, %c0_23] : memref<30x48xf32, #tpu.memory_space<vmem>>, vector<1x16xf32>
    tpu.vector_store %arg10[%c8_22, %c0_23], %29 {strides = array<i32>} : memref<30x48xf32, #tpu.memory_space<vmem>>, vector<1x16xf32>,
    %cst_24 = arith.constant 0.000000e+00 : f32
    %31 = vector.broadcast %cst_24 : f32 to vector<1x16xf32>
    %c21_25 = arith.constant 21 : index
    %c32 = arith.constant 32 : index
    %32 = vector.load %arg10[%c21_25, %c32] : memref<30x48xf32, #tpu.memory_space<vmem>>, vector<1x16xf32>
    tpu.vector_store %arg10[%c21_25, %c32], %31 {strides = array<i32>} : memref<30x48xf32, #tpu.memory_space<vmem>>, vector<1x16xf32>,
    %33 = vector.broadcast %2 : vector<14x1xf32> to vector<14x16xf32>
    %34 = arith.mulf %28, %33 : vector<14x16xf32>
    %c9_26 = arith.constant 9 : index
    %c0_27 = arith.constant 0 : index
    %35 = vector.load %arg10[%c9_26, %c0_27] : memref<30x48xf32, #tpu.memory_space<vmem>>, vector<14x16xf32>
    tpu.vector_store %arg10[%c9_26, %c0_27], %34 {strides = array<i32>} : memref<30x48xf32, #tpu.memory_space<vmem>>, vector<14x16xf32>,
    %c8_28 = arith.constant 8 : index
    %c16_29 = arith.constant 16 : index
    %36 = vector.load %arg10[%c8_28, %c16_29] : memref<30x48xf32, #tpu.memory_space<vmem>>, vector<14x16xf32>
    tpu.vector_store %arg10[%c8_28, %c16_29], %28 {strides = array<i32>} : memref<30x48xf32, #tpu.memory_space<vmem>>, vector<14x16xf32>,
    %37 = vector.broadcast %1 : vector<14x1xf32> to vector<14x16xf32>
    %38 = arith.mulf %28, %37 : vector<14x16xf32>
    %c7_30 = arith.constant 7 : index
    %c32_31 = arith.constant 32 : index
    %39 = vector.load %arg10[%c7_30, %c32_31] : memref<30x48xf32, #tpu.memory_space<vmem>>, vector<14x16xf32>
    tpu.vector_store %arg10[%c7_30, %c32_31], %38 {strides = array<i32>} : memref<30x48xf32, #tpu.memory_space<vmem>>, vector<14x16xf32>,
    %c8_32 = arith.constant 8 : index
    %c0_33 = arith.constant 0 : index
    %40 = vector.load %arg10[%c8_32, %c0_33] : memref<30x48xf32, #tpu.memory_space<vmem>>, vector<14x48xf32>
    %c0_34 = arith.constant 0 : index
    %c0_35 = arith.constant 0 : index
    %41 = vector.load %arg6[%c0_34, %c0_35] : memref<48x32xf32, #tpu.memory_space<vmem>>, vector<48x32xf32>
    %cst_36 = arith.constant dense<0.000000e+00> : vector<14x32xf32>
    %42 = tpu.matmul %40, %41, %cst_36 {dimension_numbers = #tpu.dot_dimension_numbers<[1], [0], [0], [1], [0, 0, 1, 1], [], []>} : vector<14x48xf32>, vector<48x32xf32>, vector<14x32xf32> -> vector<14x32xf32>
    %c0_37 = arith.constant 0 : index
    %c0_38 = arith.constant 0 : index
    %43 = vector.load %arg7[%c0_37, %c0_38] : memref<1x32xf32, #tpu.memory_space<vmem>>, vector<1x32xf32>
    %44 = vector.broadcast %43 : vector<1x32xf32> to vector<14x32xf32>
    %45 = arith.addf %42, %44 : vector<14x32xf32>
    %cst_39 = arith.constant 0.000000e+00 : f32
    %46 = vector.broadcast %cst_39 : f32 to vector<14x32xf32>
    %47 = arith.maximumf %45, %46 : vector<14x32xf32>
    %c0_40 = arith.constant 0 : index
    %c0_41 = arith.constant 0 : index
    %48 = vector.load %arg8[%c0_40, %c0_41] : memref<14x32xf32, #tpu.memory_space<vmem>>, vector<14x32xf32>
    tpu.vector_store %arg8[%c0_40, %c0_41], %47 {strides = array<i32>} : memref<14x32xf32, #tpu.memory_space<vmem>>, vector<14x32xf32>,
    return
  }
  func.func @transform_0(%arg0: i32) -> (i32, i32) {
    %c0_i32 = arith.constant 0 : i32
    %c0_i32_0 = arith.constant 0 : i32
    return %arg0, %c0_i32 : i32, i32
  }
  func.func @transform_1(%arg0: i32) -> (i32, i32) {
    %c0_i32 = arith.constant 0 : i32
    %c0_i32_0 = arith.constant 0 : i32
    %c0_i32_1 = arith.constant 0 : i32
    return %c0_i32, %c0_i32_0 : i32, i32
  }
  func.func @transform_2(%arg0: i32) -> (i32, i32) {
    %c0_i32 = arith.constant 0 : i32
    %c0_i32_0 = arith.constant 0 : i32
    %c0_i32_1 = arith.constant 0 : i32
    return %c0_i32, %c0_i32_0 : i32, i32
  }
  func.func @transform_3(%arg0: i32) -> (i32, i32) {
    %c0_i32 = arith.constant 0 : i32
    %c0_i32_0 = arith.constant 0 : i32
    %c0_i32_1 = arith.constant 0 : i32
    return %c0_i32, %c0_i32_0 : i32, i32
  }
  func.func @transform_4(%arg0: i32) -> (i32, i32) {
    %c0_i32 = arith.constant 0 : i32
    %c0_i32_0 = arith.constant 0 : i32
    %c0_i32_1 = arith.constant 0 : i32
    return %c0_i32, %c0_i32_0 : i32, i32
  }
  func.func @transform_5(%arg0: i32) -> (i32, i32) {
    %c0_i32 = arith.constant 0 : i32
    %c0_i32_0 = arith.constant 0 : i32
    %c0_i32_1 = arith.constant 0 : i32
    return %c0_i32, %c0_i32_0 : i32, i32
  }
  func.func @transform_6(%arg0: i32) -> (i32, i32) {
    %c0_i32 = arith.constant 0 : i32
    %c0_i32_0 = arith.constant 0 : i32
    %c0_i32_1 = arith.constant 0 : i32
    return %c0_i32, %c0_i32_0 : i32, i32
  }
  func.func @transform_7(%arg0: i32) -> (i32, i32) {
    %c0_i32 = arith.constant 0 : i32
    %c0_i32_0 = arith.constant 0 : i32
    return %arg0, %c0_i32 : i32, i32
  }
}

</mosaic_0001>

<bundles_post_ra>
// kernel: tpu_custom_call.1
= control target key start
LH: loop header
LB: loop body
LE: loop exit
PB: predicated region body
PF: predicated region fallthrough
CT: control target
= control target key end

     0   :  { %vm45_vm0 = vcmask 1045504   ;;  %vm38_vm1 = vcmask 113664   ;;  %s641_s0 = inlined_call_operand.vmem [shape: f32[14,14], index: 0, kind: input, shape index: {}]   ;;  %s642_s1 = inlined_call_operand.vmem [shape: f32[14,8], index: 1, kind: input, shape index: {}]   ;;  %s643_s2 = inlined_call_operand.vmem [shape: f32[1,8], index: 2, kind: input, shape index: {}]   ;;  %s644_s3 = inlined_call_operand.vmem [shape: f32[24,16], index: 3, kind: input, shape index: {}]   ;;  %s645_s4 = inlined_call_operand.vmem [shape: f32[1,16], index: 4, kind: input, shape index: {}]   ;;  %s646_s5 = inlined_call_operand.vmem [shape: f32[48,32], index: 5, kind: input, shape index: {}]   ;;  %s647_s6 = inlined_call_operand.vmem [shape: f32[1,32], index: 6, kind: input, shape index: {}]   ;;  %s648_s7 = inlined_call_operand.hbm [shape: f32[14,32], index: 7, kind: output, shape index: {}]  }
   0x1   :  { %v30_v0 = vld [vmem:[%s642_s1 + $0x8] sm:$0x3f]  ;;  %v29_v1 = vld [vmem:[%s642_s1] sm:$0xff] }
   0x2   :  { %v27_v2 = vld [vmem:[%s641_s0] sm:$0xff]  ;;  %456 = vmatprep.subr.msk.mxu1 %vm45_vm0, %v30_v0 }
   0x3   :  { %460 = vmatprep.mubr.msk.f32.mxu1 %vm38_vm1, %v27_v2 }
   0x4   :  { %12 = vsyncpa [#allocation5], 0  ;;  %457 = vmatpush3.msk.msra.mxu1 %vm45_vm0, %v30_v0  ;;  %v28_v3 = vld [vmem:[%s641_s0 + $0x8] sm:$0x3f]  ;;  %v519_v4 = vmov 12   ;;  %v520_v5 = vmov 13  }
   0x5   :  { %495 = vset.pattern.permute.xlu0 %v519_v4  ;;  %458 = vmatprep.subr.mxu1 %v29_v1  ;;  %vm128_vm2 = vcmask 188544   ;;  %v521_v6 = vmov 0.0   ;;  %vm126_vm3 = vcmask 57344   ;;  %v429_v9 = vld [vmem:[%s643_s2] ss:$0 sm:$0xff]  ;;  %v182_v10 = vld [vmem:[%s644_s3 + $0x10] sm:$0xff] }
   0x6   :  { %496 = vset.pattern.permute.xlu1 %v520_v5  ;;  %459 = vmatpush3.msra.mxu1 %v29_v1  ;;  %129 = vst.msk [vmem:[#allocation2 + $0x15] sm:$0x1] %vm128_vm2, %v521_v6  ;;  %v181_v11 = vld [vmem:[%s644_s3 + $0x8] sm:$0xff]  ;;  %v180_v13 = vld [vmem:[%s644_s3] sm:$0xff]  ;;  %vm142_vm4 = vcmask 62464   ;;  %s522_s2 = smov 8  }
   0x7   :  { %131 = vperm.xlu1 %496, %v27_v2   ;;  %461 = vmatmul.mubr.msk.f32.vlgmr.msra.gmra.mxu1 %vm38_vm1, %v28_v3  ;;  %127 = vst.msk [vmem:[#allocation2 + $0x8] sm:$0x1] %vm126_vm3, %v521_v6  ;;  %vm140_vm5 = vcmask 64512   ;;  %s523_s3 = smov 16   ;;  %vm154_vm6 = vcmask 128064   ;;  %vm152_vm7 = vcmask 130112  }
   0x8   :  { %157 = vperm.xlu0 %495, %v27_v2   ;;  %463 = vmatprep.subr.mxu1 %v182_v10  ;;  %vm176_vm8 = vcmask 193664   ;;  %vm174_vm9 = vcmask 195712   ;;  %vm190_vm10 = vcmask 195584   ;;  %vm276_vm11 = vcmask 385280   ;;  %v317_v31 = vld [vmem:[%s646_s5 + $0x28] sm:$0xff]  ;;  %v316_v32 = vld [vmem:[%s646_s5 + $0x20] sm:$0xff] }
   0x9   :  { %464 = vmatpush3.msra.mxu1 %v182_v10  ;;  %277 = vst.msk [vmem:[#allocation3 + $0x15] sm:$0x1] %vm276_vm11, %v521_v6  ;;  %vm274_vm12 = vcmask 122880   ;;  %472 = vmatprep.subr.mxu0 %v317_v31  ;;  %v433_v33 = vld [vmem:[%s645_s4] ss:$0 sm:$0xff]  ;;  %v315_v34 = vld [vmem:[%s646_s5 + $0x18] sm:$0xff] }
   0xa   :  { %465 = vmatprep.subr.mxu1 %v181_v11  ;;  %275 = vst.msk [vmem:[#allocation3 + $0x8] sm:$0x1] %vm274_vm12, %v521_v6  ;;  %473 = vmatpush3.msra.mxu0 %v317_v31  ;;  %v314_v35 = vld [vmem:[%s646_s5 + $0x10] sm:$0xff]  ;;  %v313_v37 = vld [vmem:[%s646_s5 + $0x8] sm:$0xff]  ;;  %v312_v40 = vld [vmem:[%s646_s5] sm:$0xff]  ;;  %vm282_vm13 = vcmask 128000  }
   0xb   :  { %135 = vperm.xlu1 %496, %v28_v3   ;;  %466 = vmatpush3.msra.mxu1 %v181_v11  ;;  %vm280_vm14 = vcmask 130048   ;;  %s524_s5 = smov 32   ;;  %vm294_vm15 = vcmask 259200   ;;  %vm292_vm0 = vcmask 261248   ;;  %vm308_vm1 = vcmask 390400   ;;  %s525_s30 = smov [#allocation4]  }
   0xc   :  { %161 = vperm.xlu0 %495, %v28_v3   ;;  %467 = vmatprep.subr.mxu1 %v180_v13  ;;  %vm306_vm2 = vcmask 392448   ;;  %vm325_vm3 = vcmask 392192   ;;  %v436_v54 = vld [vmem:[%s647_s6] ss:$0 sm:$0xff]  ;;  %s418_s8 = sshll.u32 %s525_s30, 4  ;;  %s419_s8 = int_to_ptr.vmem [resolvable:$true] %s418_s8 }
   0xd   :  { %468 = vmatpush3.msra.mxu1 %v180_v13  ;;  %474 = vmatprep.subr.mxu0 %v316_v32  ;;  %s497_s0 = scalar_lea.vmem %s419_s8, 256  ;;  %p502_p1 = scmp.lt.s32.totalorder %s419_s8, %s419_s8 }
   0xe   :  { %475 = vmatpush3.msra.mxu0 %v316_v32  ;;  %p498_p0 = scmp.ne.s32.totalorder %s419_s8, %s497_s0  ;;  %p503_p2 = scmp.lt.s32.totalorder %s497_s0, %s497_s0 }
   0xf   :  { %476 = vmatprep.subr.mxu0 %v315_v34 }
  0x10   :  { %477 = vmatpush3.msra.mxu0 %v315_v34  ;;  %p504_p3 = por %p503_p2, %p502_p1 }
  0x11   :  { %478 = vmatprep.subr.mxu0 %v314_v35 }
  0x12   :  { %479 = vmatpush3.msra.mxu0 %v314_v35  ;;  %p505_p4 = pnand %p504_p3, %p498_p0 }
  0x13   :  { %480 = vmatprep.subr.mxu0 %v313_v37 }
  0x14   :  { %481 = vmatpush3.msra.mxu0 %v313_v37 }
  0x15   :  { %482 = vmatprep.subr.mxu0 %v312_v40 }
  0x16   :  { %483 = vmatpush3.msra.mxu0 %v312_v40 }
  0x82   :  { %v579_v7 = vpop.permute.xlu1 %131 }
  0x83   :  { %v581_v8 = vpop.permute.xlu0 %157 }
  0x86   :  { %v595_v16 = vpop.permute.xlu1 %135 }
  0x87   :  { %v597_v19 = vpop.permute.xlu0 %161 }
  0xc7   :  { %v462_v12 = vpop.f32.mrf.mxu1 }
  0xc8   :  { %v121_v14 = vadd.f32 %v462_v12, %v429_v9 }
  0xc9   :  { %v115_v15 = vpop.f32.mrf.mxu1 }
  0xca   :  { %v125_v17 = vmax.f32 %v121_v14, 0.0  ;;  %v116_v18 = vadd.f32 %v429_v9, %v115_v15 }
  0xcc   :  { %v124_v20 = vmax.f32 %v116_v18, 0.0  ;;  %v139_v21 = vmul.f32 %v595_v16, %v125_v17  ;;  %148 = vrot.lane.b32.xlu1 %v125_v17, %s522_s2  ;;  %v165_v23 = vmul.f32 %v597_v19, %v125_v17 }
  0xce   :  { %v138_v22 = vmul.f32 %v579_v7, %v124_v20  ;;  %143 = vst.msk [vmem:[#allocation2 + $0x11] sm:$0x3f] %vm142_vm4, %v139_v21  ;;  %146 = vrot.lane.b32.xlu0 %v124_v20, %s522_s2  ;;  %v164_v24 = vmul.f32 %v581_v8, %v124_v20  ;;  %vm411_vm4 = vcmask 259072  }
  0xd0   :  { %170 = vrot.lane.b32.xlu1 %v165_v23, %s523_s3  ;;  %141 = vst.msk [vmem:[#allocation2 + $0x9] sm:$0xff] %vm140_vm5, %v138_v22  ;;  %vm409_vm5 = vcmask 261120  }
  0xd2   :  { %168 = vrot.lane.b32.xlu0 %v164_v24, %s523_s3 }
 0x13e   :  { %v149_v25 = vpop.permute.xlu1 %148 }
 0x13f   :  { %155 = vst.msk [vmem:[#allocation2 + $0x10] sm:$0x3f] %vm154_vm6, %v149_v25 }
 0x140   :  { %v147_v26 = vpop.permute.xlu0 %146 }
 0x141   :  { %153 = vst.msk [vmem:[#allocation2 + $0x8] sm:$0xff] %vm152_vm7, %v147_v26 }
 0x142   :  { %v171_v27 = vpop.permute.xlu1 %170 }
 0x143   :  { %177 = vst.msk [vmem:[#allocation2 + $0xf] sm:$0x3f] %vm176_vm8, %v171_v27 }
 0x144   :  { %v169_v28 = vpop.permute.xlu0 %168 }
 0x145   :  { %175 = vst.msk [vmem:[#allocation2 + $0x7] sm:$0xff] %vm174_vm9, %v169_v28 }
 0x14a   :  { %v179_v30 = vld [vmem:[#allocation2 + $0x10] sm:$0x3f] }
 0x14c   :  { %v178_v29 = vld [vmem:[#allocation2 + $0x8] sm:$0xff] }
 0x14d   :  { %469 = vmatprep.mubr.msk.f32.mxu1 %vm190_vm10, %v178_v29 }
 0x14e   :  { %470 = vmatmul.mubr.msk.f32.vlgmr.msra.gmra.mxu1 %vm190_vm10, %v179_v30 }
 0x20e   :  { %v471_v36 = vpop.f32.mrf.mxu1 }
 0x20f   :  { %v269_v38 = vadd.f32 %v471_v36, %v433_v33 }
 0x210   :  { %v263_v39 = vpop.f32.mrf.mxu1 }
 0x211   :  { %v273_v41 = vmax.f32 %v269_v38, 0.0  ;;  %v264_v42 = vadd.f32 %v433_v33, %v263_v39 }
 0x213   :  { %v279_v43 = vmul.f32 %v273_v41, %v595_v16  ;;  %v272_v44 = vmax.f32 %v264_v42, 0.0  ;;  %288 = vrot.lane.b32.xlu1 %v273_v41, %s523_s3  ;;  %v297_v46 = vmul.f32 %v273_v41, %v597_v19 }
 0x215   :  { %v278_v45 = vmul.f32 %v272_v44, %v579_v7  ;;  %286 = vrot.lane.b32.xlu0 %v272_v44, %s523_s3  ;;  %283 = vst.msk [vmem:[#allocation3 + $0x11] sm:$0x3f] %vm282_vm13, %v279_v43  ;;  %v296_v47 = vmul.f32 %v272_v44, %v581_v8 }
 0x217   :  { %302 = vrot.lane.b32.xlu1 %v297_v46, %s524_s5  ;;  %281 = vst.msk [vmem:[#allocation3 + $0x9] sm:$0xff] %vm280_vm14, %v278_v45 }
 0x219   :  { %300 = vrot.lane.b32.xlu0 %v296_v47, %s524_s5 }
 0x285   :  { %v289_v48 = vpop.permute.xlu1 %288 }
 0x286   :  { %295 = vst.msk [vmem:[#allocation3 + $0x10] sm:$0x3f] %vm294_vm15, %v289_v48 }
 0x287   :  { %v287_v49 = vpop.permute.xlu0 %286 }
 0x288   :  { %293 = vst.msk [vmem:[#allocation3 + $0x8] sm:$0xff] %vm292_vm0, %v287_v49 }
 0x289   :  { %v303_v50 = vpop.permute.xlu1 %302 }
 0x28a   :  { %309 = vst.msk [vmem:[#allocation3 + $0xf] sm:$0x3f] %vm308_vm1, %v303_v50 }
 0x28b   :  { %v301_v51 = vpop.permute.xlu0 %300 }
 0x28c   :  { %307 = vst.msk [vmem:[#allocation3 + $0x7] sm:$0xff] %vm306_vm2, %v301_v51 }
 0x291   :  { %v311_v53 = vld [vmem:[#allocation3 + $0x10] sm:$0x3f] }
 0x293   :  { %v310_v52 = vld [vmem:[#allocation3 + $0x8] sm:$0xff] }
 0x294   :  { %484 = vmatprep.mubr.msk.f32.mxu0 %vm325_vm3, %v310_v52 }
 0x295   :  { %485 = vmatmul.mubr.msk.f32.vlgmr.msra.gmra.mxu0 %vm325_vm3, %v311_v53 }
 0x355   :  { %v486_v55 = vpop.f32.mrf.mxu0 }
 0x356   :  { %v404_v56 = vadd.f32 %v486_v55, %v436_v54 }
 0x357   :  { %v398_v57 = vpop.f32.mrf.mxu0 }
 0x358   :  { %v408_v58 = vmax.f32 %v404_v56, 0.0  ;;  %v399_v59 = vadd.f32 %v436_v54, %v398_v57 }
 0x35a   :  { %412 = vst.msk [vmem:[#allocation4 + $0x8] sm:$0x3f] %vm411_vm4, %v408_v58  ;;  %v407_v60 = vmax.f32 %v399_v59, 0.0 }
 0x35c   :  { %410 = vst.msk [vmem:[#allocation4] sm:$0xff] %vm409_vm5, %v407_v60 }
 0x35d   :  { %508 = shalt.err (!%p505_p4)
}
 0x35e   :  { %s526_s6 = smov 128  }
 0x35f   :  { %424 = dma.vmem_to_hbm [thread:$0]  %s419_s8, 256, %s648_s7, [#allocation5], %s526_s6, %s526_s6, %s522_s2  }
 0x360   :  { %517 = dma.done.wait [#allocation5], 256  }
 0x361   :  { %518 = vsyncadd [#allocation5], 4294967040 }
 0x362   :  { %428 = vsyncpa [#allocation5], 1 }

</bundles_post_ra>
